<compile_context>
chip_gen: v7x
topology: tpu7x:2x2x1
jax: 0.10.0
libtpu: 0.0.40
codegen_flags: <defaults>
</compile_context>

<pallas_src>
import math

import jax
import jax.numpy as jnp
from jax.experimental import pallas as pl
from jax.experimental.pallas import tpu as pltpu


def _round_up(a, b):
    return (a + b - 1) // b * b


# ---------------------------------------------------------------------------
# Stage 1: support = (x * t) @ W   ->  bf16 [N_pad, Fout_pad]
# ---------------------------------------------------------------------------
def support_kernel(x_ref, t_ref, w_ref, s_ref):
    # Fold t into the (smaller) LHS before the matmul.
    xs = (x_ref[...].astype(jnp.float32) * t_ref[...]).astype(jnp.bfloat16)
    s_ref[...] = jnp.dot(
        xs, w_ref[...], preferred_element_type=jnp.float32
    ).astype(jnp.bfloat16)


# ---------------------------------------------------------------------------
# Stage 2: out = adj @ support + bias   (tiled, f32 accumulation)
# ---------------------------------------------------------------------------
def adj_kernel(adj_ref, s_ref, b_ref, o_ref, acc_ref):
    k = pl.program_id(1)

    @pl.when(k == 0)
    def _():
        acc_ref[...] = jnp.zeros_like(acc_ref)

    acc_ref[...] += jnp.dot(
        adj_ref[...], s_ref[...], preferred_element_type=jnp.float32
    )

    @pl.when(k == pl.num_programs(1) - 1)
    def _():
        o_ref[...] = (acc_ref[...] + b_ref[...]).astype(o_ref.dtype)


def tgcn_forward(x, adj, t, weight, bias, *, tm=256, tk=512):
    """TGraphConvolution forward.  x:[N,Fin], adj:[N,N], t:[N], W:[Fin,Fout], b:[Fout]."""
    N, f_in = x.shape
    f_out = weight.shape[1]

    # Tile sizes (shrink for toy shapes; TM=256 / TK=512 keeps the per-step
    # VMEM footprint well under v7x's 32 MiB scoped default while amortizing
    # MXU drain & per-grid-step overhead).
    TM = tm if N >= tm else _round_up(N, 8)       # output row tile
    TK = tk if N >= tk else _round_up(N, 128)     # reduction tile
    n_rows = _round_up(N, TM)                     # padded adj rows / output rows
    n_cols = _round_up(N, TK)                     # padded adj cols / support rows
    fo_p = _round_up(f_out, 128)                  # lane-dense output width

    f32, bf16 = jnp.float32, jnp.bfloat16

    # Zero padding keeps the math exact (padded rows/cols contribute nothing).
    x_p = jnp.zeros((n_cols, f_in), bf16).at[:N, :].set(x.astype(bf16))
    t_p = jnp.zeros((n_cols, 1), f32).at[:N, 0].set(t.reshape(-1).astype(f32))
    w_p = jnp.zeros((f_in, fo_p), bf16).at[:, :f_out].set(weight.astype(bf16))
    adj_p = jnp.zeros((n_rows, n_cols), bf16).at[:N, :N].set(adj.astype(bf16))
    b_p = jnp.zeros((1, fo_p), f32).at[0, :f_out].set(bias.reshape(-1).astype(f32))

    # ---- Stage 1: support (computed once, hoisted out of the adj tiling) ----
    support = pl.pallas_call(
        support_kernel,
        out_shape=jax.ShapeDtypeStruct((n_cols, fo_p), bf16),
        grid=(n_cols // TK,),
        in_specs=[
            pl.BlockSpec((TK, f_in), lambda i: (i, 0)),
            pl.BlockSpec((TK, 1), lambda i: (i, 0)),
            pl.BlockSpec((f_in, fo_p), lambda i: (0, 0)),
        ],
        out_specs=pl.BlockSpec((TK, fo_p), lambda i: (i, 0)),
        compiler_params=pltpu.CompilerParams(dimension_semantics=("parallel",)),
    )(x_p, t_p, w_p)

    # ---- Stage 2: adj @ support + bias (row tiles parallel, K reduction) ----
    out_p = pl.pallas_call(
        adj_kernel,
        out_shape=jax.ShapeDtypeStruct((n_rows, fo_p), f32),
        grid=(n_rows // TM, n_cols // TK),
        in_specs=[
            pl.BlockSpec((TM, TK), lambda i, k: (i, k)),
            pl.BlockSpec((TK, fo_p), lambda i, k: (k, 0)),
            pl.BlockSpec((1, fo_p), lambda i, k: (0, 0)),
        ],
        out_specs=pl.BlockSpec((TM, fo_p), lambda i, k: (i, 0)),
        scratch_shapes=[pltpu.VMEM((TM, fo_p), f32)],
        compiler_params=pltpu.CompilerParams(
            dimension_semantics=("parallel", "arbitrary")
        ),
    )(adj_p, support, b_p)

    return out_p[:N, :f_out]


if __name__ == "__main__":
    # Small shapes consistent with the module's forward.
    N = 8          # number of graph nodes
    F_IN = 16      # in_features
    F_OUT = 32     # out_features

    key = jax.random.PRNGKey(0)
    k_x, k_adj, k_t, k_w, k_b = jax.random.split(key, 5)

    x = jax.random.normal(k_x, (N, F_IN), dtype=jnp.float32)
    # TODO(synk): adj handled dense; a truly sparse adjacency (torch.spmm) would
    # need a block-sparse / scalar-prefetch index_map.
    adj = jax.random.uniform(k_adj, (N, N), dtype=jnp.float32)
    t = jax.random.normal(k_t, (N,), dtype=jnp.float32)

    # reset_parameters(): uniform(-stdv, stdv), stdv = 1/sqrt(out_features)
    stdv = 1.0 / math.sqrt(F_OUT)
    weight = jax.random.uniform(k_w, (F_IN, F_OUT), dtype=jnp.float32,
                                minval=-stdv, maxval=stdv)
    bias = jax.random.uniform(k_b, (F_OUT,), dtype=jnp.float32,
                              minval=-stdv, maxval=stdv)

    out = jax.block_until_ready(tgcn_forward(x, adj, t, weight, bias))

    # Pure-JAX f32 reference; bf16 MXU operands -> looser tolerance.
    ref = adj @ ((x @ weight) * t[:, None]) + bias[None, :]
    assert out.shape == (N, F_OUT)
    assert jnp.allclose(out, ref, atol=5e-2, rtol=5e-2), "mismatch vs reference"

    print("KERNEL_OK")
</pallas_src>

<mosaic_0001>
module attributes {stable_mosaic.version = 11 : i64} {
  func.func @support_kernel(%arg0: i32, %arg1: memref<128x16xbf16, #tpu.memory_space<vmem>>, %arg2: memref<128x1xf32, #tpu.memory_space<vmem>>, %arg3: memref<16x128xbf16, #tpu.memory_space<vmem>>, %arg4: memref<128x128xbf16, #tpu.memory_space<vmem>>) attributes {dimension_semantics = [#tpu.dimension_semantics<parallel>], iteration_bounds = array<i64: 1>, scalar_prefetch = 0 : i64, scratch_operands = 0 : i64, tpu.core_type = #tpu.core_type<tc>, window_params = [{transform_indices = @transform_0, window_bounds = array<i64: 128, 16>}, {transform_indices = @transform_1, window_bounds = array<i64: 128, 1>}, {pipeline_mode = #tpu.pipeline_mode<synchronous>, transform_indices = @transform_2, window_bounds = array<i64: 16, 128>}, {transform_indices = @transform_3, window_bounds = array<i64: 128, 128>}]} {
    %c0 = arith.constant 0 : index
    %c0_0 = arith.constant 0 : index
    %0 = vector.load %arg1[%c0, %c0_0] : memref<128x16xbf16, #tpu.memory_space<vmem>>, vector<128x16xbf16>
    %1 = arith.extf %0 : vector<128x16xbf16> to vector<128x16xf32>
    %c0_1 = arith.constant 0 : index
    %c0_2 = arith.constant 0 : index
    %2 = vector.load %arg2[%c0_1, %c0_2] : memref<128x1xf32, #tpu.memory_space<vmem>>, vector<128x1xf32>
    %3 = vector.broadcast %2 : vector<128x1xf32> to vector<128x16xf32>
    %4 = arith.mulf %1, %3 : vector<128x16xf32>
    %5 = arith.truncf %4 : vector<128x16xf32> to vector<128x16xbf16>
    %c0_3 = arith.constant 0 : index
    %c0_4 = arith.constant 0 : index
    %6 = vector.load %arg3[%c0_3, %c0_4] : memref<16x128xbf16, #tpu.memory_space<vmem>>, vector<16x128xbf16>
    %cst = arith.constant dense<0.000000e+00> : vector<128x128xf32>
    %7 = tpu.matmul %5, %6, %cst {dimension_numbers = #tpu.dot_dimension_numbers<[1], [0], [0], [1], [0, 0, 1, 1], [], []>} : vector<128x16xbf16>, vector<16x128xbf16>, vector<128x128xf32> -> vector<128x128xf32>
    %8 = arith.truncf %7 : vector<128x128xf32> to vector<128x128xbf16>
    %c0_5 = arith.constant 0 : index
    %c0_6 = arith.constant 0 : index
    %9 = vector.load %arg4[%c0_5, %c0_6] : memref<128x128xbf16, #tpu.memory_space<vmem>>, vector<128x128xbf16>
    tpu.vector_store %arg4[%c0_5, %c0_6], %8 {strides = array<i32>} : memref<128x128xbf16, #tpu.memory_space<vmem>>, vector<128x128xbf16>,
    return
  }
  func.func @transform_0(%arg0: i32) -> (i32, i32) {
    %c0_i32 = arith.constant 0 : i32
    %c0_i32_0 = arith.constant 0 : i32
    return %arg0, %c0_i32 : i32, i32
  }
  func.func @transform_1(%arg0: i32) -> (i32, i32) {
    %c0_i32 = arith.constant 0 : i32
    %c0_i32_0 = arith.constant 0 : i32
    return %arg0, %c0_i32 : i32, i32
  }
  func.func @transform_2(%arg0: i32) -> (i32, i32) {
    %c0_i32 = arith.constant 0 : i32
    %c0_i32_0 = arith.constant 0 : i32
    %c0_i32_1 = arith.constant 0 : i32
    return %c0_i32, %c0_i32_0 : i32, i32
  }
  func.func @transform_3(%arg0: i32) -> (i32, i32) {
    %c0_i32 = arith.constant 0 : i32
    %c0_i32_0 = arith.constant 0 : i32
    return %arg0, %c0_i32 : i32, i32
  }
}

</mosaic_0001>

<bundles_post_ra>
// kernel: tpu_custom_call.1
= control target key start
LH: loop header
LB: loop body
LE: loop exit
PB: predicated region body
PF: predicated region fallthrough
CT: control target
= control target key end

     0   :  { %v581_v2 = vmov 0   ;;  %s700_s0 = inlined_call_operand.vmem [shape: bf16[128,16], index: 0, kind: input, shape index: {}]   ;;  %s701_s1 = inlined_call_operand.vmem [shape: f32[128,1], index: 1, kind: input, shape index: {}]   ;;  %s702_s2 = inlined_call_operand.vmem [shape: bf16[16,128], index: 2, kind: input, shape index: {}]   ;;  %s703_s3 = inlined_call_operand.hbm [shape: bf16[128,128], index: 3, kind: output, shape index: {}]  }
   0x1   :  { %v56_v0 = vld [vmem:[%s701_s1 + $0x40] sm:$0xff]  ;;  %555 = vset.pattern.permute.xlu1 %v581_v2  ;;  %554 = vset.pattern.permute.xlu0 %v581_v2  ;;  %v57_v3 = vld [vmem:[%s701_s1 + $0x48] sm:$0xff] }
   0x2   :  { %v48_v1 = vld [vmem:[%s701_s1] sm:$0xff]  ;;  %106 = vperm.xlu1 %555, %v56_v0   ;;  %v49_v4 = vld [vmem:[%s701_s1 + $0x8] sm:$0xff] }
   0x3   :  { %66 = vperm.xlu0 %554, %v48_v1  }
   0x6   :  { %111 = vperm.xlu1 %555, %v57_v3  }
   0x7   :  { %71 = vperm.xlu0 %554, %v49_v4  }
   0x8   :  { %8 = vsyncpa [#allocation3], 0  ;;  %v51_v5 = vld [vmem:[%s701_s1 + $0x18] sm:$0xff]  ;;  %v50_v6 = vld [vmem:[%s701_s1 + $0x10] sm:$0xff]  ;;  %vm176_vm0 = vcmask 130048  }
   0x9   :  { %v556_v7 = vld [vmem:[%s702_s2] sm:$0xff]   ;;  %v59_v8 = vld [vmem:[%s701_s1 + $0x58] sm:$0xff]  ;;  %v58_v9 = vld [vmem:[%s701_s1 + $0x50] sm:$0xff] }
   0xa   :  { %81 = vperm.xlu1 %555, %v51_v5   ;;  %530 = vmatprep.subr.bf16.mxu0 %v556_v7  ;;  %v53_v10 = vld [vmem:[%s701_s1 + $0x28] sm:$0xff]  ;;  %v52_v11 = vld [vmem:[%s701_s1 + $0x20] sm:$0xff]  ;;  %v55_v14 = vld [vmem:[%s701_s1 + $0x38] sm:$0xff] }
   0xb   :  { %76 = vperm.xlu0 %554, %v50_v6   ;;  %548 = vmatprep.subr.bf16.mxu1 %v556_v7  ;;  %v61_v12 = vld [vmem:[%s701_s1 + $0x68] sm:$0xff]  ;;  %v60_v13 = vld [vmem:[%s701_s1 + $0x60] sm:$0xff]  ;;  %v54_v15 = vld [vmem:[%s701_s1 + $0x30] sm:$0xff] }
   0xc   :  { %531 = vmatpush3.bf16.msra.mxu0 %v556_v7  ;;  %549 = vmatpush3.bf16.msra.mxu1 %v556_v7  ;;  %v63_v16 = vld [vmem:[%s701_s1 + $0x78] sm:$0xff]  ;;  %v62_v17 = vld [vmem:[%s701_s1 + $0x70] sm:$0xff]  ;;  %v510_v18 = vld [vmem:[%s700_s0 + $0x20] sm:$0xff]  }
   0xd   :  { %v436_v19 = vld [vmem:[%s700_s0] sm:$0xff]   ;;  %v453_v22 = vunpack.c.l.bf16 %v510_v18  ;;  %v454_v24 = vunpack.c.h.bf16 %v510_v18  ;;  %v507_v26 = vld [vmem:[%s700_s0 + $0x8] sm:$0xff]   ;;  %v508_v44 = vld [vmem:[%s700_s0 + $0x10] sm:$0xff]  }
   0xe   :  { %121 = vperm.xlu1 %555, %v59_v8   ;;  %v437_v23 = vunpack.c.l.bf16 %v436_v19  ;;  %v438_v25 = vunpack.c.h.bf16 %v436_v19  ;;  %v442_v29 = vunpack.c.h.bf16 %v507_v26  ;;  %v441_v30 = vunpack.c.l.bf16 %v507_v26  ;;  %v511_v35 = vld [vmem:[%s700_s0 + $0x28] sm:$0xff]   ;;  %v512_v52 = vld [vmem:[%s700_s0 + $0x30] sm:$0xff]   ;;  %v509_v60 = vld [vmem:[%s700_s0 + $0x18] sm:$0xff]  }
   0xf   :  { %116 = vperm.xlu0 %554, %v58_v9   ;;  %v458_v42 = vunpack.c.h.bf16 %v511_v35  ;;  %v457_v43 = vunpack.c.l.bf16 %v511_v35  ;;  %v446_v50 = vunpack.c.h.bf16 %v508_v44  ;;  %v445_v51 = vunpack.c.l.bf16 %v508_v44  ;;  %v513_v4 = vld [vmem:[%s700_s0 + $0x38] sm:$0xff]   ;;  %s582_s0 = smov [#allocation2]  }
  0x10   :  { %v462_v58 = vunpack.c.h.bf16 %v512_v52  ;;  %v461_v59 = vunpack.c.l.bf16 %v512_v52  ;;  %v450_v2 = vunpack.c.h.bf16 %v509_v60  ;;  %v449_v3 = vunpack.c.l.bf16 %v509_v60  ;;  %s383_s5 = sshll.u32 %s582_s0, 4  ;;  %s384_s5 = int_to_ptr.vmem [resolvable:$true] %s383_s5 }
  0x11   :  { %s557_s6 = scalar_lea.vmem %s384_s5, 1024  ;;  %p562_p1 = scmp.lt.s32.totalorder %s384_s5, %s384_s5 }
  0x12   :  { %91 = vperm.xlu1 %555, %v53_v10   ;;  %v466_v10 = vunpack.c.h.bf16 %v513_v4  ;;  %p558_p0 = scmp.ne.s32.totalorder %s384_s5, %s557_s6  ;;  %p563_p2 = scmp.lt.s32.totalorder %s557_s6, %s557_s6 }
  0x13   :  { %86 = vperm.xlu0 %554, %v52_v11   ;;  %v465_v11 = vunpack.c.l.bf16 %v513_v4 }
  0x14   :  { %p564_p3 = por %p563_p2, %p562_p1 }
  0x16   :  { %131 = vperm.xlu1 %555, %v61_v12   ;;  %p565_p4 = pnand %p564_p3, %p558_p0 }
  0x17   :  { %126 = vperm.xlu0 %554, %v60_v13  }
  0x1a   :  { %101 = vperm.xlu1 %555, %v55_v14  }
  0x1b   :  { %96 = vperm.xlu0 %554, %v54_v15  }
  0x1e   :  { %141 = vperm.xlu1 %555, %v63_v16  }
  0x1f   :  { %136 = vperm.xlu0 %554, %v62_v17  }
  0x81   :  { %v107_v20 = vpop.permute.xlu1 %106 }
  0x82   :  { %v67_v21 = vpop.permute.xlu0 %66  ;;  %v152_v31 = vmul.f32 %v453_v22, %v107_v20 }
  0x83   :  { %v144_v32 = vmul.f32 %v437_v23, %v67_v21 }
  0x85   :  { %v112_v27 = vpop.permute.xlu1 %111 }
  0x86   :  { %v72_v28 = vpop.permute.xlu0 %71  ;;  %v153_v33 = vmul.f32 %v454_v24, %v112_v27 }
  0x87   :  { %v145_v34 = vmul.f32 %v438_v25, %v72_v28 }
  0x88   :  { %v164_v37 = vpack.c.bf16 %v153_v33, %v152_v31 }
  0x89   :  { %v160_v36 = vpack.c.bf16 %v145_v34, %v144_v32  ;;  %v82_v38 = vpop.permute.xlu1 %81 }
  0x8a   :  { %v77_v39 = vpop.permute.xlu0 %76  ;;  %v147_v40 = vmul.f32 %v442_v29, %v82_v38  ;;  %540 = vmatprep.mubr.msk.bf16.mxu1 %vm176_vm0, %v164_v37 }
  0x8b   :  { %v146_v41 = vmul.f32 %v441_v30, %v77_v39  ;;  %532 = vmatprep.mubr.msk.bf16.mxu0 %vm176_vm0, %v160_v36 }
  0x8d   :  { %v161_v45 = vpack.c.bf16 %v147_v40, %v146_v41  ;;  %v122_v46 = vpop.permute.xlu1 %121 }
  0x8e   :  { %v117_v47 = vpop.permute.xlu0 %116  ;;  %v155_v48 = vmul.f32 %v458_v42, %v122_v46 }
  0x8f   :  { %v154_v49 = vmul.f32 %v457_v43, %v117_v47  ;;  %533 = vmatmul.mubr.msk.bf16.vlgmr.msra.gmra.mrb[0].mxu0 %vm176_vm0, %v161_v45 }
  0x91   :  { %v165_v53 = vpack.c.bf16 %v155_v48, %v154_v49  ;;  %v92_v54 = vpop.permute.xlu1 %91 }
  0x92   :  { %v87_v55 = vpop.permute.xlu0 %86  ;;  %v149_v56 = vmul.f32 %v446_v50, %v92_v54 }
  0x93   :  { %v148_v57 = vmul.f32 %v445_v51, %v87_v55  ;;  %541 = vmatmul.mubr.msk.bf16.vlgmr.msra.gmra.mrb[0].mxu1 %vm176_vm0, %v165_v53 }
  0x95   :  { %v162_v61 = vpack.c.bf16 %v149_v56, %v148_v57  ;;  %v132_v62 = vpop.permute.xlu1 %131 }
  0x96   :  { %v127_v63 = vpop.permute.xlu0 %126  ;;  %v157_v0 = vmul.f32 %v462_v58, %v132_v62 }
  0x97   :  { %v156_v1 = vmul.f32 %v461_v59, %v127_v63  ;;  %536 = vmatprep.mubr.msk.bf16.mxu0 %vm176_vm0, %v162_v61 }
  0x99   :  { %v166_v5 = vpack.c.bf16 %v157_v0, %v156_v1  ;;  %v102_v6 = vpop.permute.xlu1 %101 }
  0x9a   :  { %v97_v7 = vpop.permute.xlu0 %96  ;;  %v151_v8 = vmul.f32 %v450_v2, %v102_v6 }
  0x9b   :  { %v150_v9 = vmul.f32 %v449_v3, %v97_v7  ;;  %544 = vmatprep.mubr.msk.bf16.mxu1 %vm176_vm0, %v166_v5 }
  0x9d   :  { %v163_v12 = vpack.c.bf16 %v151_v8, %v150_v9  ;;  %v142_v13 = vpop.permute.xlu1 %141 }
  0x9e   :  { %v137_v14 = vpop.permute.xlu0 %136  ;;  %v159_v15 = vmul.f32 %v466_v10, %v142_v13 }
  0x9f   :  { %v158_v16 = vmul.f32 %v465_v11, %v137_v14  ;;  %537 = vmatmul.mubr.msk.bf16.gmra.mrb[4].mxu0 %vm176_vm0, %v163_v12 }
  0xa1   :  { %v167_v17 = vpack.c.bf16 %v159_v15, %v158_v16 }
  0xa3   :  { %545 = vmatmul.mubr.msk.bf16.gmra.mrb[4].mxu1 %vm176_vm0, %v167_v17 }
 0x162   :  { %v534_v18 = vpop.f32.mrb[0].mxu0 }
 0x163   :  { %v235_v19 = vpop.f32.mrb[1].mxu0 }
 0x164   :  { %v535_v20 = vpop.f32.mrb[2].mxu0 }
 0x165   :  { %v475_v21 = vpack.c.bf16 %v535_v20, %v534_v18  ;;  %v238_v22 = vpop.f32.mrb[3].mxu0 }
 0x166   :  { %v470_v23 = vpack.c.bf16 %v238_v22, %v235_v19  ;;  %v542_v24 = vpop.f32.mrb[0].mxu1 }
 0x167   :  { %514 = vst [vmem:[#allocation2 + $0x8] sm:$0xff] %v475_v21   ;;  %v267_v25 = vpop.f32.mrb[1].mxu1 }
 0x168   :  { %471 = vst [vmem:[#allocation2] sm:$0xff] %v470_v23   ;;  %v543_v26 = vpop.f32.mrb[2].mxu1 }
 0x169   :  { %v495_v27 = vpack.c.bf16 %v543_v26, %v542_v24  ;;  %v270_v28 = vpop.f32.mrb[3].mxu1 }
 0x16a   :  { %v490_v29 = vpack.c.bf16 %v270_v28, %v267_v25 }
 0x16b   :  { %518 = vst [vmem:[#allocation2 + $0x28] sm:$0xff] %v495_v27  }
 0x16c   :  { %517 = vst [vmem:[#allocation2 + $0x20] sm:$0xff] %v490_v29  }
 0x172   :  { %v538_v30 = vpop.f32.mrb[4].mxu0 }
 0x173   :  { %v251_v31 = vpop.f32.mrb[5].mxu0 }
 0x174   :  { %v539_v32 = vpop.f32.mrb[6].mxu0 }
 0x175   :  { %v485_v33 = vpack.c.bf16 %v539_v32, %v538_v30  ;;  %v254_v34 = vpop.f32.mrb[7].mxu0 }
 0x176   :  { %v480_v35 = vpack.c.bf16 %v254_v34, %v251_v31  ;;  %v546_v36 = vpop.f32.mrb[4].mxu1 }
 0x177   :  { %516 = vst [vmem:[#allocation2 + $0x18] sm:$0xff] %v485_v33   ;;  %v283_v37 = vpop.f32.mrb[5].mxu1 }
 0x178   :  { %515 = vst [vmem:[#allocation2 + $0x10] sm:$0xff] %v480_v35   ;;  %v547_v38 = vpop.f32.mrb[6].mxu1 }
 0x179   :  { %v505_v39 = vpack.c.bf16 %v547_v38, %v546_v36  ;;  %v286_v40 = vpop.f32.mrb[7].mxu1 }
 0x17a   :  { %v500_v41 = vpack.c.bf16 %v286_v40, %v283_v37 }
 0x17b   :  { %520 = vst [vmem:[#allocation2 + $0x38] sm:$0xff] %v505_v39  }
 0x17c   :  { %519 = vst [vmem:[#allocation2 + $0x30] sm:$0xff] %v500_v41  }
 0x17d   :  { %568 = shalt.err (!%p565_p4)
}
 0x17e   :  { %s569_s9 = scalar_lea.hbm %s703_s3, 1024 }
 0x17f   :  { %p570_p5 = scmp.ne.s32.totalorder %s703_s3, %s569_s9  ;;  %p573_p6 = scmp.lt.u32.totalorder %s569_s9, %s703_s3 }
 0x181   :  { %p575_p7 = pnand %p573_p6, %p570_p5 }
 0x183   :  { %578 = shalt.err (!%p575_p7)
}
 0x184   :  { %s583_s14 = smov 64   ;;  %s584_s15 = smov 4  }
 0x185   :  { %389 = dma.vmem_to_hbm [thread:$0]  %s384_s5, 1024, %s703_s3, [#allocation3], %s583_s14, %s583_s14, %s584_s15  }
 0x186   :  { %579 = dma.done.wait [#allocation3], 1024  }
 0x187   :  { %580 = vsyncadd [#allocation3], 4294966272 }
 0x188   :  { %393 = vsyncpa [#allocation3], 1 }

</bundles_post_ra>
